<compile_context>
chip_gen: v6e
topology: v6e:2x2x1
jax: 0.10.0
libtpu: 0.0.40
codegen_flags: <defaults>
</compile_context>

<pallas_src>
import math
import jax
import jax.numpy as jnp
from jax.experimental import pallas as pl
from jax.experimental.pallas import tpu as pltpu


def _round_up(x, m):
    return ((x + m - 1) // m) * m


def _vmem_budget_bytes():
    """Generation-aware scoped-VMEM budget (~75% of physical VMEM)."""
    default = 48 * 1024 * 1024  # safe even on v7x (64 MiB physical per TC)
    try:
        cap = getattr(pltpu.get_tpu_info(), "vmem_capacity_bytes", None)
        if cap:
            return int(cap) * 3 // 4  # ~96 MiB on v5e/v6e, ~48 MiB on v7x
    except Exception:
        pass
    return default


def _embedfc_kernel(x_ref, w1_ref, b1_ref, w2_ref, b2_ref, o_ref):
    w1 = w1_ref[...]
    w2 = w2_ref[...]
    # First linear: (TILE_N, Din) @ (Din, E) + (1, E); f32 accumulation on MXU.
    h = jnp.dot(x_ref[...].astype(w1.dtype), w1,
                preferred_element_type=jnp.float32)
    h = h + b1_ref[...].astype(jnp.float32)
    # Exact (erf-based) GELU — matches PyTorch nn.GELU() default numerics.
    # (tanh-approx GELU would shift work onto the EUP, but changes numerics.)
    g = 0.5 * h * (1.0 + jax.lax.erf(h * (1.0 / math.sqrt(2.0))))
    # Second linear: cast to the weight dtype so bf16 weights hit the MXU's
    # bf16 peak; accumulation stays f32 via preferred_element_type.
    y = jnp.dot(g.astype(w2.dtype), w2, preferred_element_type=jnp.float32)
    y = y + b2_ref[...].astype(jnp.float32)
    o_ref[...] = y.astype(o_ref.dtype)


def embed_fc(x, w1, b1, w2, b2, input_dim, *, tile_n=1024):
    """EmbedFC forward: x.view(-1, input_dim) -> Linear -> GELU -> Linear."""
    x2d = x.reshape(-1, input_dim)        # glue reshape in plain JAX
    n = x2d.shape[0]
    emb_dim = w2.shape[1]
    dtype = x2d.dtype

    # --- Lane padding of the embedding (output) axis. ---
    # emb_dim >= 128: pad to a multiple of 128 for unmasked lane-dense stores.
    # emb_dim <  128: keep exact width — extra output bytes + a slice pass
    # would cost more than the masked partial stores they'd avoid.
    e_out = _round_up(emb_dim, 128) if emb_dim >= 128 else emb_dim
    if e_out != emb_dim:
        pad_e = e_out - emb_dim
        # Zero-padded weight columns/rows & biases contribute 0 (GELU(0)=0).
        w1 = jnp.pad(w1, ((0, 0), (0, pad_e)))
        b1 = jnp.pad(b1, (0, pad_e))
        w2 = jnp.pad(w2, ((0, pad_e), (0, pad_e)))
        b2 = jnp.pad(b2, (0, pad_e))

    # --- Row tile sizing against a properly-accounted VMEM budget. ---
    budget = _vmem_budget_bytes()
    act_bytes = jnp.dtype(dtype).itemsize
    w_bytes = jnp.dtype(w1.dtype).itemsize
    in_lane = _round_up(input_dim, 128)   # lane-padded VMEM layout width of x
    e_lane = _round_up(e_out, 128)        # lane-padded VMEM layout width of E

    def _vmem_bytes(tn):
        x_blk = 2 * tn * in_lane * act_bytes      # double-buffered input tiles
        o_blk = 2 * tn * e_lane * act_bytes       # double-buffered output tiles
        inter = 2 * tn * e_lane * 4               # f32 intermediates h and g
        wts = (input_dim * e_lane + e_lane * e_lane + 2 * e_lane) * w_bytes
        return x_blk + o_blk + inter + wts        # weights single-buffered

    tile_n = min(tile_n, _round_up(n, 8))
    tile_n = max(8, _round_up(tile_n, 8))
    while tile_n > 8 and _vmem_bytes(tile_n) > budget:
        tile_n //= 2
    # Keep >= 2 row tiles when N allows so v7x megacore can use both TCs.
    if n >= 16 and pl.cdiv(n, tile_n) < 2:
        tile_n = max(8, _round_up(pl.cdiv(n, 2), 8))

    grid = (pl.cdiv(n, tile_n),)   # ragged tail tile handled by Pallas masking

    b1r = b1.reshape(1, -1)
    b2r = b2.reshape(1, -1)

    flops = 2 * n * input_dim * e_out + 2 * n * e_out * e_out
    bytes_accessed = (n * input_dim * act_bytes + n * e_out * act_bytes
                      + (input_dim * e_out + e_out * e_out + 2 * e_out) * w_bytes)
    cost = pl.CostEstimate(flops=flops, transcendentals=n * e_out,
                           bytes_accessed=bytes_accessed)

    def _call(single_buffer_weights):
        resident = (dict(pipeline_mode=pl.Buffered(1))
                    if single_buffer_weights else {})
        return pl.pallas_call(
            _embedfc_kernel,
            out_shape=jax.ShapeDtypeStruct((n, e_out), dtype),
            grid=grid,
            in_specs=[
                # Streamed (double-buffered) activation tiles.
                pl.BlockSpec((tile_n, input_dim), lambda i: (i, 0)),
                # Weights/biases: constant index_map -> DMA'd once, resident;
                # Buffered(1) avoids a useless second VMEM copy.
                pl.BlockSpec((input_dim, e_out), lambda i: (0, 0), **resident),
                pl.BlockSpec((1, e_out), lambda i: (0, 0), **resident),
                pl.BlockSpec((e_out, e_out), lambda i: (0, 0), **resident),
                pl.BlockSpec((1, e_out), lambda i: (0, 0), **resident),
            ],
            out_specs=pl.BlockSpec((tile_n, e_out), lambda i: (i, 0)),
            compiler_params=pltpu.CompilerParams(
                dimension_semantics=("parallel",),   # shard row tiles on v7x
                vmem_limit_bytes=budget,
            ),
            cost_estimate=cost,
        )(x2d, w1, b1r, w2, b2r)

    try:
        out = _call(True)
    except Exception:
        # Fallback: default double-buffered weights (correct, just more VMEM).
        out = _call(False)

    return out[:, :emb_dim] if e_out != emb_dim else out


def init_params(key, input_dim, emb_dim, dtype=jnp.float32):
    """Deterministic init mimicking nn.Linear's uniform(-1/sqrt(fan_in), ...)."""
    k1, k2, k3, k4 = jax.random.split(key, 4)
    lim1 = 1.0 / math.sqrt(input_dim)
    lim2 = 1.0 / math.sqrt(emb_dim)
    # Weights stored as (in_features, out_features) — see layout comment above.
    w1 = jax.random.uniform(k1, (input_dim, emb_dim), dtype, -lim1, lim1)
    b1 = jax.random.uniform(k2, (emb_dim,), dtype, -lim1, lim1)
    w2 = jax.random.uniform(k3, (emb_dim, emb_dim), dtype, -lim2, lim2)
    b2 = jax.random.uniform(k4, (emb_dim,), dtype, -lim2, lim2)
    return w1, b1, w2, b2


if __name__ == "__main__":
    input_dim = 16
    emb_dim = 32

    key = jax.random.PRNGKey(0)
    kx, kp = jax.random.split(key)

    # x of shape (2, 4, 16); the forward flattens it to (8, 16).
    x = jax.random.normal(kx, (2, 4, input_dim), dtype=jnp.float32)
    w1, b1, w2, b2 = init_params(kp, input_dim, emb_dim)

    out = embed_fc(x, w1, b1, w2, b2, input_dim)
    out = jax.block_until_ready(out)

    # Reference check in plain JAX (exact erf GELU, matching PyTorch default).
    x2d = x.reshape(-1, input_dim)
    h = x2d @ w1 + b1
    g = 0.5 * h * (1.0 + jax.lax.erf(h / math.sqrt(2.0)))
    ref = g @ w2 + b2
    assert out.shape == (8, emb_dim)
    assert jnp.allclose(out, ref, atol=1e-5, rtol=1e-5)

    print("KERNEL_OK")
</pallas_src>

<mosaic_0001>
module attributes {stable_mosaic.version = 11 : i64} {
  func.func @_embedfc_kernel(%arg0: i32, %arg1: memref<8x16xf32, #tpu.memory_space<vmem>>, %arg2: memref<16x32xf32, #tpu.memory_space<vmem>>, %arg3: memref<1x32xf32, #tpu.memory_space<vmem>>, %arg4: memref<32x32xf32, #tpu.memory_space<vmem>>, %arg5: memref<1x32xf32, #tpu.memory_space<vmem>>, %arg6: memref<8x32xf32, #tpu.memory_space<vmem>>) attributes {dimension_semantics = [#tpu.dimension_semantics<parallel>], iteration_bounds = array<i64: 1>, scalar_prefetch = 0 : i64, scratch_operands = 0 : i64, tpu.core_type = #tpu.core_type<tc>, window_params = [{transform_indices = @transform_0, window_bounds = array<i64: 8, 16>}, {pipeline_mode = #tpu.pipeline_mode<synchronous>, transform_indices = @transform_1, window_bounds = array<i64: 16, 32>}, {pipeline_mode = #tpu.pipeline_mode<synchronous>, transform_indices = @transform_2, window_bounds = array<i64: 1, 32>}, {pipeline_mode = #tpu.pipeline_mode<synchronous>, transform_indices = @transform_3, window_bounds = array<i64: 32, 32>}, {pipeline_mode = #tpu.pipeline_mode<synchronous>, transform_indices = @transform_4, window_bounds = array<i64: 1, 32>}, {transform_indices = @transform_5, window_bounds = array<i64: 8, 32>}]} {
    %c0 = arith.constant 0 : index
    %c0_0 = arith.constant 0 : index
    %0 = vector.load %arg2[%c0, %c0_0] : memref<16x32xf32, #tpu.memory_space<vmem>>, vector<16x32xf32>
    %c0_1 = arith.constant 0 : index
    %c0_2 = arith.constant 0 : index
    %1 = vector.load %arg4[%c0_1, %c0_2] : memref<32x32xf32, #tpu.memory_space<vmem>>, vector<32x32xf32>
    %c0_3 = arith.constant 0 : index
    %c0_4 = arith.constant 0 : index
    %2 = vector.load %arg1[%c0_3, %c0_4] : memref<8x16xf32, #tpu.memory_space<vmem>>, vector<8x16xf32>
    %cst = arith.constant dense<0.000000e+00> : vector<8x32xf32>
    %3 = tpu.matmul %2, %0, %cst {dimension_numbers = #tpu.dot_dimension_numbers<[1], [0], [0], [1], [0, 0, 1, 1], [], []>} : vector<8x16xf32>, vector<16x32xf32>, vector<8x32xf32> -> vector<8x32xf32>
    %c0_5 = arith.constant 0 : index
    %c0_6 = arith.constant 0 : index
    %4 = vector.load %arg3[%c0_5, %c0_6] : memref<1x32xf32, #tpu.memory_space<vmem>>, vector<1x32xf32>
    %5 = vector.broadcast %4 : vector<1x32xf32> to vector<8x32xf32>
    %6 = arith.addf %3, %5 : vector<8x32xf32>
    %cst_7 = arith.constant 5.000000e-01 : f32
    %7 = vector.broadcast %cst_7 : f32 to vector<8x32xf32>
    %8 = arith.mulf %7, %6 : vector<8x32xf32>
    %cst_8 = arith.constant 0.707106769 : f32
    %9 = vector.broadcast %cst_8 : f32 to vector<8x32xf32>
    %10 = arith.mulf %6, %9 : vector<8x32xf32>
    %11 = math.erf %10 : vector<8x32xf32>
    %cst_9 = arith.constant 1.000000e+00 : f32
    %12 = vector.broadcast %cst_9 : f32 to vector<8x32xf32>
    %13 = arith.addf %12, %11 : vector<8x32xf32>
    %14 = arith.mulf %8, %13 : vector<8x32xf32>
    %cst_10 = arith.constant dense<0.000000e+00> : vector<8x32xf32>
    %15 = tpu.matmul %14, %1, %cst_10 {dimension_numbers = #tpu.dot_dimension_numbers<[1], [0], [0], [1], [0, 0, 1, 1], [], []>} : vector<8x32xf32>, vector<32x32xf32>, vector<8x32xf32> -> vector<8x32xf32>
    %c0_11 = arith.constant 0 : index
    %c0_12 = arith.constant 0 : index
    %16 = vector.load %arg5[%c0_11, %c0_12] : memref<1x32xf32, #tpu.memory_space<vmem>>, vector<1x32xf32>
    %17 = vector.broadcast %16 : vector<1x32xf32> to vector<8x32xf32>
    %18 = arith.addf %15, %17 : vector<8x32xf32>
    %c0_13 = arith.constant 0 : index
    %c0_14 = arith.constant 0 : index
    %19 = vector.load %arg6[%c0_13, %c0_14] : memref<8x32xf32, #tpu.memory_space<vmem>>, vector<8x32xf32>
    tpu.vector_store %arg6[%c0_13, %c0_14], %18 {strides = array<i32>} : memref<8x32xf32, #tpu.memory_space<vmem>>, vector<8x32xf32>,
    return
  }
  func.func @transform_0(%arg0: i32) -> (i32, i32) {
    %c0_i32 = arith.constant 0 : i32
    %c0_i32_0 = arith.constant 0 : i32
    return %arg0, %c0_i32 : i32, i32
  }
  func.func @transform_1(%arg0: i32) -> (i32, i32) {
    %c0_i32 = arith.constant 0 : i32
    %c0_i32_0 = arith.constant 0 : i32
    %c0_i32_1 = arith.constant 0 : i32
    return %c0_i32, %c0_i32_0 : i32, i32
  }
  func.func @transform_2(%arg0: i32) -> (i32, i32) {
    %c0_i32 = arith.constant 0 : i32
    %c0_i32_0 = arith.constant 0 : i32
    %c0_i32_1 = arith.constant 0 : i32
    return %c0_i32, %c0_i32_0 : i32, i32
  }
  func.func @transform_3(%arg0: i32) -> (i32, i32) {
    %c0_i32 = arith.constant 0 : i32
    %c0_i32_0 = arith.constant 0 : i32
    %c0_i32_1 = arith.constant 0 : i32
    return %c0_i32, %c0_i32_0 : i32, i32
  }
  func.func @transform_4(%arg0: i32) -> (i32, i32) {
    %c0_i32 = arith.constant 0 : i32
    %c0_i32_0 = arith.constant 0 : i32
    %c0_i32_1 = arith.constant 0 : i32
    return %c0_i32, %c0_i32_0 : i32, i32
  }
  func.func @transform_5(%arg0: i32) -> (i32, i32) {
    %c0_i32 = arith.constant 0 : i32
    %c0_i32_0 = arith.constant 0 : i32
    return %arg0, %c0_i32 : i32, i32
  }
}

module attributes {stable_mosaic.version = 11 : i64} {
  func.func @_embedfc_kernel(%arg0: i32, %arg1: memref<8x16xf32, #tpu.memory_space<vmem>>, %arg2: memref<16x32xf32, #tpu.memory_space<vmem>>, %arg3: memref<1x32xf32, #tpu.memory_space<vmem>>, %arg4: memref<32x32xf32, #tpu.memory_space<vmem>>, %arg5: memref<1x32xf32, #tpu.memory_space<vmem>>, %arg6: memref<8x32xf32, #tpu.memory_space<vmem>>) attributes {dimension_semantics = [#tpu.dimension_semantics<parallel>], iteration_bounds = array<i64: 1>, scalar_prefetch = 0 : i64, scratch_operands = 0 : i64, tpu.core_type = #tpu.core_type<tc>, window_params = [{transform_indices = @transform_0, window_bounds = array<i64: 8, 16>}, {pipeline_mode = #tpu.pipeline_mode<synchronous>, transform_indices = @transform_1, window_bounds = array<i64: 16, 32>}, {pipeline_mode = #tpu.pipeline_mode<synchronous>, transform_indices = @transform_2, window_bounds = array<i64: 1, 32>}, {pipeline_mode = #tpu.pipeline_mode<synchronous>, transform_indices = @transform_3, window_bounds = array<i64: 32, 32>}, {pipeline_mode = #tpu.pipeline_mode<synchronous>, transform_indices = @transform_4, window_bounds = array<i64: 1, 32>}, {transform_indices = @transform_5, window_bounds = array<i64: 8, 32>}]} {
    %c0 = arith.constant 0 : index
    %c0_0 = arith.constant 0 : index
    %0 = vector.load %arg2[%c0, %c0_0] : memref<16x32xf32, #tpu.memory_space<vmem>>, vector<16x32xf32>
    %c0_1 = arith.constant 0 : index
    %c0_2 = arith.constant 0 : index
    %1 = vector.load %arg4[%c0_1, %c0_2] : memref<32x32xf32, #tpu.memory_space<vmem>>, vector<32x32xf32>
    %c0_3 = arith.constant 0 : index
    %c0_4 = arith.constant 0 : index
    %2 = vector.load %arg1[%c0_3, %c0_4] : memref<8x16xf32, #tpu.memory_space<vmem>>, vector<8x16xf32>
    %cst = arith.constant dense<0.000000e+00> : vector<8x32xf32>
    %3 = tpu.matmul %2, %0, %cst {dimension_numbers = #tpu.dot_dimension_numbers<[1], [0], [0], [1], [0, 0, 1, 1], [], []>} : vector<8x16xf32>, vector<16x32xf32>, vector<8x32xf32> -> vector<8x32xf32>
    %c0_5 = arith.constant 0 : index
    %c0_6 = arith.constant 0 : index
    %4 = vector.load %arg3[%c0_5, %c0_6] : memref<1x32xf32, #tpu.memory_space<vmem>>, vector<1x32xf32>
    %5 = vector.broadcast %4 : vector<1x32xf32> to vector<8x32xf32>
    %6 = arith.addf %3, %5 : vector<8x32xf32>
    %cst_7 = arith.constant 5.000000e-01 : f32
    %7 = vector.broadcast %cst_7 : f32 to vector<8x32xf32>
    %8 = arith.mulf %7, %6 : vector<8x32xf32>
    %cst_8 = arith.constant 0.707106769 : f32
    %9 = vector.broadcast %cst_8 : f32 to vector<8x32xf32>
    %10 = arith.mulf %6, %9 : vector<8x32xf32>
    %11 = math.erf %10 : vector<8x32xf32>
    %cst_9 = arith.constant 1.000000e+00 : f32
    %12 = vector.broadcast %cst_9 : f32 to vector<8x32xf32>
    %13 = arith.addf %12, %11 : vector<8x32xf32>
    %14 = arith.mulf %8, %13 : vector<8x32xf32>
    %cst_10 = arith.constant dense<0.000000e+00> : vector<8x32xf32>
    %15 = tpu.matmul %14, %1, %cst_10 {dimension_numbers = #tpu.dot_dimension_numbers<[1], [0], [0], [1], [0, 0, 1, 1], [], []>} : vector<8x32xf32>, vector<32x32xf32>, vector<8x32xf32> -> vector<8x32xf32>
    %c0_11 = arith.constant 0 : index
    %c0_12 = arith.constant 0 : index
    %16 = vector.load %arg5[%c0_11, %c0_12] : memref<1x32xf32, #tpu.memory_space<vmem>>, vector<1x32xf32>
    %17 = vector.broadcast %16 : vector<1x32xf32> to vector<8x32xf32>
    %18 = arith.addf %15, %17 : vector<8x32xf32>
    %c0_13 = arith.constant 0 : index
    %c0_14 = arith.constant 0 : index
    %19 = vector.load %arg6[%c0_13, %c0_14] : memref<8x32xf32, #tpu.memory_space<vmem>>, vector<8x32xf32>
    tpu.vector_store %arg6[%c0_13, %c0_14], %18 {strides = array<i32>} : memref<8x32xf32, #tpu.memory_space<vmem>>, vector<8x32xf32>,
    return
  }
  func.func @transform_0(%arg0: i32) -> (i32, i32) {
    %c0_i32 = arith.constant 0 : i32
    %c0_i32_0 = arith.constant 0 : i32
    return %arg0, %c0_i32 : i32, i32
  }
  func.func @transform_1(%arg0: i32) -> (i32, i32) {
    %c0_i32 = arith.constant 0 : i32
    %c0_i32_0 = arith.constant 0 : i32
    %c0_i32_1 = arith.constant 0 : i32
    return %c0_i32, %c0_i32_0 : i32, i32
  }
  func.func @transform_2(%arg0: i32) -> (i32, i32) {
    %c0_i32 = arith.constant 0 : i32
    %c0_i32_0 = arith.constant 0 : i32
    %c0_i32_1 = arith.constant 0 : i32
    return %c0_i32, %c0_i32_0 : i32, i32
  }
  func.func @transform_3(%arg0: i32) -> (i32, i32) {
    %c0_i32 = arith.constant 0 : i32
    %c0_i32_0 = arith.constant 0 : i32
    %c0_i32_1 = arith.constant 0 : i32
    return %c0_i32, %c0_i32_0 : i32, i32
  }
  func.func @transform_4(%arg0: i32) -> (i32, i32) {
    %c0_i32 = arith.constant 0 : i32
    %c0_i32_0 = arith.constant 0 : i32
    %c0_i32_1 = arith.constant 0 : i32
    return %c0_i32, %c0_i32_0 : i32, i32
  }
  func.func @transform_5(%arg0: i32) -> (i32, i32) {
    %c0_i32 = arith.constant 0 : i32
    %c0_i32_0 = arith.constant 0 : i32
    return %arg0, %c0_i32 : i32, i32
  }
}

</mosaic_0001>

<bundles_post_ra>
// kernel: tpu_custom_call.1
= control target key start
LH: loop header
LB: loop body
LE: loop exit
PB: predicated region body
PF: predicated region fallthrough
CT: control target
= control target key end

     0   :  { %10 = vsyncpa [#allocation3], 0  ;;  %s433_s0 = inlined_call_operand.hbm [shape: f32[8,16], index: 0, kind: input, shape index: {}]   ;;  %s434_s1 = inlined_call_operand.hbm [shape: f32[16,32], index: 1, kind: input, shape index: {}]   ;;  %s435_s2 = inlined_call_operand.vmem [shape: f32[1,32], index: 2, kind: input, shape index: {}]   ;;  %s436_s3 = inlined_call_operand.hbm [shape: f32[32,32], index: 3, kind: input, shape index: {}]   ;;  %s437_s4 = inlined_call_operand.vmem [shape: f32[1,32], index: 4, kind: input, shape index: {}]   ;;  %s438_s5 = inlined_call_operand.hbm [shape: f32[8,32], index: 5, kind: output, shape index: {}]  }
   0x1   :  { %11 = vsyncpa [#allocation6], 0 }
   0x2   :  { %12 = vsyncpa [#allocation4], 0  ;;  %s377_s18 = smov [#allocation5]  }
   0x3   :  { %s28_s19 = sshll.u32 %s377_s18, 4  ;;  %s29_s19 = int_to_ptr.vmem [resolvable:$true] %s28_s19 }
   0x4   :  { %s299_s20 = scalar_lea.vmem %s29_s19, 256  ;;  %p304_p1 = scmp.lt.s32.totalorder %s29_s19, %s29_s19 }
   0x5   :  { %p300_p0 = scmp.ne.s32.totalorder %s29_s19, %s299_s20  ;;  %p305_p2 = scmp.lt.s32.totalorder %s299_s20, %s299_s20 }
   0x7   :  { %p306_p3 = por %p305_p2, %p304_p1 }
   0x9   :  { %p307_p4 = pnand %p306_p3, %p300_p0 }
   0xb   :  { %310 = shalt.err (!%p307_p4)
}
   0xc   :  { %s378_s21 = smov 128   ;;  %s379_s22 = smov 8  }
   0xd   :  { %34 = dma.hbm_to_vmem [thread:$0]  %s434_s1, 256, %s29_s19, [#allocation6], %s378_s21, %s378_s21, %s379_s22  }
   0xe   :  { %s380_s25 = smov [#allocation2]   ;;  %s381_s27 = smov [#allocation7]  }
   0xf   :  { %s19_s26 = sshll.u32 %s380_s25, 4  ;;  %s42_s28 = sshll.u32 %s381_s27, 4  ;;  %s20_s26 = int_to_ptr.vmem [resolvable:$true] %s19_s26  ;;  %s43_s28 = int_to_ptr.vmem [resolvable:$true] %s42_s28 }
  0x10   :  { %s319_s29 = scalar_lea.vmem %s20_s26, 128  ;;  %p324_p6 = scmp.lt.s32.totalorder %s20_s26, %s20_s26 }
  0x11   :  { %p320_p5 = scmp.ne.s32.totalorder %s20_s26, %s319_s29  ;;  %p325_p7 = scmp.lt.s32.totalorder %s319_s29, %s319_s29 }
  0x13   :  { %p326_p8 = por %p325_p7, %p324_p6 }
  0x15   :  { %p327_p9 = pnand %p326_p8, %p320_p5 }
  0x17   :  { %330 = shalt.err (!%p327_p9)
}
  0x18   :  { %22 = dma.hbm_to_vmem [thread:$0]  %s433_s0, 128, %s20_s26, [#allocation3]  }
  0x19   :  { %s339_s7 = scalar_lea.vmem %s43_s28, 512  ;;  %p344_p11 = scmp.lt.s32.totalorder %s43_s28, %s43_s28 }
  0x1a   :  { %p340_p10 = scmp.ne.s32.totalorder %s43_s28, %s339_s7  ;;  %p345_p12 = scmp.lt.s32.totalorder %s339_s7, %s339_s7 }
  0x1c   :  { %p346_p13 = por %p345_p12, %p344_p11 }
  0x1e   :  { %p347_p0 = pnand %p346_p13, %p340_p10 }
  0x20   :  { %350 = shalt.err (!%p347_p0)
}
  0x21   :  { %48 = dma.hbm_to_vmem [thread:$0]  %s436_s3, 512, %s43_s28, [#allocation6], %s378_s21, %s378_s21, %s379_s22  }
  0x22   :  { %371 = dma.done.wait [#allocation3], 128  }
  0x23   :  { %372 = vsyncadd [#allocation3], 4294967168 }
  0x24   :  { %373 = dma.done.wait [#allocation6], 768  }
  0x25   :  { %374 = vsyncadd [#allocation6], 4294966528  ;;  %v382_v0 = vmov 0.0   ;;  %vm383_vm0 = vmmov 0   ;;  %v61_v1 = vld [vmem:[#allocation5 + $0x8] sm:$0xff]  ;;  %v60_v2 = vld [vmem:[#allocation5] sm:$0xff] }
  0x26   :  { %263 = vmatprep.subr.mxu0 %v382_v0  ;;  %267 = vmatprep.mubr.msk.f32.mxu0 %vm383_vm0, %v382_v0  ;;  %v66_v3 = vld [vmem:[#allocation2] sm:$0xff]  ;;  %vm74_vm1 = vcmask 130048   ;;  %v65_v4 = vld [vmem:[#allocation7 + $0x18] sm:$0xff]  ;;  %v64_v5 = vld [vmem:[#allocation7 + $0x10] sm:$0xff]  ;;  %vm160_vm2 = vcmask 261120   ;;  %s384_s11 = smov [#allocation8]  }
  0x27   :  { %270 = vmatprep.subr.mxu1 %v382_v0  ;;  %278 = vmatprep.mubr.msk.f32.mxu1 %vm383_vm0, %v382_v0  ;;  %v63_v6 = vld [vmem:[#allocation7 + $0x8] sm:$0xff]  ;;  %v62_v7 = vld [vmem:[#allocation7] sm:$0xff]  ;;  %s241_s12 = sshll.u32 %s384_s11, 4  ;;  %s242_s12 = int_to_ptr.vmem [resolvable:$true] %s241_s12 }
  0x28   :  { %264 = vmatpush3.msra.mxu0 %v61_v1  ;;  %271 = vmatpush3.msra.mxu1 %v65_v4  ;;  %v251_v8 = vld [vmem:[%s435_s2] ss:$0 sm:$0xff]  ;;  %s351_s2 = scalar_lea.vmem %s242_s12, 128  ;;  %p356_p2 = scmp.lt.s32.totalorder %s242_s12, %s242_s12 }
  0x29   :  { %265 = vmatprep.subr.mxu0 %v382_v0  ;;  %272 = vmatprep.subr.mxu1 %v382_v0  ;;  %v253_v17 = vld [vmem:[%s437_s4] ss:$0 sm:$0xff]  ;;  %p352_p1 = scmp.ne.s32.totalorder %s242_s12, %s351_s2  ;;  %p357_p3 = scmp.lt.s32.totalorder %s351_s2, %s351_s2 }
  0x2a   :  { %266 = vmatpush3.msra.mxu0 %v60_v2  ;;  %273 = vmatpush3.msra.mxu1 %v64_v5 }
  0x2b   :  { %268 = vmatmul.mubr.msk.f32.vlgmr.msra.gmra.mxu0 %vm74_vm1, %v66_v3  ;;  %274 = vmatprep.subr.mxu1 %v382_v0  ;;  %p358_p4 = por %p357_p3, %p356_p2 }
  0x2c   :  { %275 = vmatpush3.msra.mxu1 %v63_v6 }
  0x2d   :  { %276 = vmatprep.subr.mxu1 %v382_v0  ;;  %p359_p5 = pnand %p358_p4, %p352_p1 }
  0x2e   :  { %277 = vmatpush3.msra.mxu1 %v62_v7 }
  0xeb   :  { %v144_v9 = vpop.f32.mrf.mxu0 }
  0xec   :  { %v145_v10 = vadd.f32 %v251_v8, %v144_v9 }
  0xed   :  { %v269_v11 = vpop.f32.mrf.mxu0 }
  0xee   :  { %v149_v12 = vmul.f32 0.70710677, %v145_v10  ;;  %v148_v14 = vmul.f32 0.5, %v145_v10 }
  0xf0   :  { %289 = verf.f32 %v149_v12 }
  0xfd   :  { %v290_v13 = vpop.eup %289 }
  0xfe   :  { %v151_v15 = vadd.f32 1.0, %v290_v13 }
 0x100   :  { %v152_v16 = vmul.f32 %v151_v15, %v148_v14 }
 0x102   :  { %279 = vmatmul.mubr.msk.f32.vlgmr.msra.gmra.mxu1 %vm160_vm2, %v152_v16 }
 0x1c2   :  { %v230_v18 = vpop.f32.mrf.mxu1 }
 0x1c3   :  { %v231_v19 = vadd.f32 %v253_v17, %v230_v18 }
 0x1c4   :  { %v280_v20 = vpop.f32.mrf.mxu1 }
 0x1c5   :  { %234 = vst.msk [vmem:[#allocation8] sm:$0xff] %vm160_vm2, %v231_v19 }
 0x1c6   :  { %362 = shalt.err (!%p359_p5)
}
 0x1c7   :  { %244 = dma.vmem_to_hbm [thread:$0]  %s242_s12, 128, %s438_s5, [#allocation4]  }
 0x1c8   :  { %375 = dma.done.wait [#allocation4], 128  }
 0x1c9   :  { %376 = vsyncadd [#allocation4], 4294967168 }
 0x1ca   :  { %248 = vsyncpa [#allocation3], 1 }
 0x1cb   :  { %249 = vsyncpa [#allocation6], 1 }
 0x1cc   :  { %250 = vsyncpa [#allocation4], 1 }

// kernel: tpu_custom_call.1
= control target key start
LH: loop header
LB: loop body
LE: loop exit
PB: predicated region body
PF: predicated region fallthrough
CT: control target
= control target key end

     0   :  { %10 = vsyncpa [#allocation3], 0  ;;  %s433_s0 = inlined_call_operand.hbm [shape: f32[8,16], index: 0, kind: input, shape index: {}]   ;;  %s434_s1 = inlined_call_operand.hbm [shape: f32[16,32], index: 1, kind: input, shape index: {}]   ;;  %s435_s2 = inlined_call_operand.vmem [shape: f32[1,32], index: 2, kind: input, shape index: {}]   ;;  %s436_s3 = inlined_call_operand.hbm [shape: f32[32,32], index: 3, kind: input, shape index: {}]   ;;  %s437_s4 = inlined_call_operand.vmem [shape: f32[1,32], index: 4, kind: input, shape index: {}]   ;;  %s438_s5 = inlined_call_operand.hbm [shape: f32[8,32], index: 5, kind: output, shape index: {}]  }
   0x1   :  { %11 = vsyncpa [#allocation6], 0 }
   0x2   :  { %12 = vsyncpa [#allocation4], 0  ;;  %s377_s18 = smov [#allocation5]  }
   0x3   :  { %s28_s19 = sshll.u32 %s377_s18, 4  ;;  %s29_s19 = int_to_ptr.vmem [resolvable:$true] %s28_s19 }
   0x4   :  { %s299_s20 = scalar_lea.vmem %s29_s19, 256  ;;  %p304_p1 = scmp.lt.s32.totalorder %s29_s19, %s29_s19 }
   0x5   :  { %p300_p0 = scmp.ne.s32.totalorder %s29_s19, %s299_s20  ;;  %p305_p2 = scmp.lt.s32.totalorder %s299_s20, %s299_s20 }
   0x7   :  { %p306_p3 = por %p305_p2, %p304_p1 }
   0x9   :  { %p307_p4 = pnand %p306_p3, %p300_p0 }
   0xb   :  { %310 = shalt.err (!%p307_p4)
}
   0xc   :  { %s378_s21 = smov 128   ;;  %s379_s22 = smov 8  }
   0xd   :  { %34 = dma.hbm_to_vmem [thread:$0]  %s434_s1, 256, %s29_s19, [#allocation6], %s378_s21, %s378_s21, %s379_s22  }
   0xe   :  { %s380_s25 = smov [#allocation2]   ;;  %s381_s27 = smov [#allocation7]  }
   0xf   :  { %s19_s26 = sshll.u32 %s380_s25, 4  ;;  %s42_s28 = sshll.u32 %s381_s27, 4  ;;  %s20_s26 = int_to_ptr.vmem [resolvable:$true] %s19_s26  ;;  %s43_s28 = int_to_ptr.vmem [resolvable:$true] %s42_s28 }
  0x10   :  { %s319_s29 = scalar_lea.vmem %s20_s26, 128  ;;  %p324_p6 = scmp.lt.s32.totalorder %s20_s26, %s20_s26 }
  0x11   :  { %p320_p5 = scmp.ne.s32.totalorder %s20_s26, %s319_s29  ;;  %p325_p7 = scmp.lt.s32.totalorder %s319_s29, %s319_s29 }
  0x13   :  { %p326_p8 = por %p325_p7, %p324_p6 }
  0x15   :  { %p327_p9 = pnand %p326_p8, %p320_p5 }
  0x17   :  { %330 = shalt.err (!%p327_p9)
}
  0x18   :  { %22 = dma.hbm_to_vmem [thread:$0]  %s433_s0, 128, %s20_s26, [#allocation3]  }
  0x19   :  { %s339_s7 = scalar_lea.vmem %s43_s28, 512  ;;  %p344_p11 = scmp.lt.s32.totalorder %s43_s28, %s43_s28 }
  0x1a   :  { %p340_p10 = scmp.ne.s32.totalorder %s43_s28, %s339_s7  ;;  %p345_p12 = scmp.lt.s32.totalorder %s339_s7, %s339_s7 }
  0x1c   :  { %p346_p13 = por %p345_p12, %p344_p11 }
  0x1e   :  { %p347_p0 = pnand %p346_p13, %p340_p10 }
  0x20   :  { %350 = shalt.err (!%p347_p0)
}
  0x21   :  { %48 = dma.hbm_to_vmem [thread:$0]  %s436_s3, 512, %s43_s28, [#allocation6], %s378_s21, %s378_s21, %s379_s22  }
  0x22   :  { %371 = dma.done.wait [#allocation3], 128  }
  0x23   :  { %372 = vsyncadd [#allocation3], 4294967168 }
  0x24   :  { %373 = dma.done.wait [#allocation6], 768  }
  0x25   :  { %374 = vsyncadd [#allocation6], 4294966528  ;;  %v382_v0 = vmov 0.0   ;;  %vm383_vm0 = vmmov 0   ;;  %v61_v1 = vld [vmem:[#allocation5 + $0x8] sm:$0xff]  ;;  %v60_v2 = vld [vmem:[#allocation5] sm:$0xff] }
  0x26   :  { %263 = vmatprep.subr.mxu0 %v382_v0  ;;  %267 = vmatprep.mubr.msk.f32.mxu0 %vm383_vm0, %v382_v0  ;;  %v66_v3 = vld [vmem:[#allocation2] sm:$0xff]  ;;  %vm74_vm1 = vcmask 130048   ;;  %v65_v4 = vld [vmem:[#allocation7 + $0x18] sm:$0xff]  ;;  %v64_v5 = vld [vmem:[#allocation7 + $0x10] sm:$0xff]  ;;  %vm160_vm2 = vcmask 261120   ;;  %s384_s11 = smov [#allocation8]  }
  0x27   :  { %270 = vmatprep.subr.mxu1 %v382_v0  ;;  %278 = vmatprep.mubr.msk.f32.mxu1 %vm383_vm0, %v382_v0  ;;  %v63_v6 = vld [vmem:[#allocation7 + $0x8] sm:$0xff]  ;;  %v62_v7 = vld [vmem:[#allocation7] sm:$0xff]  ;;  %s241_s12 = sshll.u32 %s384_s11, 4  ;;  %s242_s12 = int_to_ptr.vmem [resolvable:$true] %s241_s12 }
  0x28   :  { %264 = vmatpush3.msra.mxu0 %v61_v1  ;;  %271 = vmatpush3.msra.mxu1 %v65_v4  ;;  %v251_v8 = vld [vmem:[%s435_s2] ss:$0 sm:$0xff]  ;;  %s351_s2 = scalar_lea.vmem %s242_s12, 128  ;;  %p356_p2 = scmp.lt.s32.totalorder %s242_s12, %s242_s12 }
  0x29   :  { %265 = vmatprep.subr.mxu0 %v382_v0  ;;  %272 = vmatprep.subr.mxu1 %v382_v0  ;;  %v253_v17 = vld [vmem:[%s437_s4] ss:$0 sm:$0xff]  ;;  %p352_p1 = scmp.ne.s32.totalorder %s242_s12, %s351_s2  ;;  %p357_p3 = scmp.lt.s32.totalorder %s351_s2, %s351_s2 }
  0x2a   :  { %266 = vmatpush3.msra.mxu0 %v60_v2  ;;  %273 = vmatpush3.msra.mxu1 %v64_v5 }
  0x2b   :  { %268 = vmatmul.mubr.msk.f32.vlgmr.msra.gmra.mxu0 %vm74_vm1, %v66_v3  ;;  %274 = vmatprep.subr.mxu1 %v382_v0  ;;  %p358_p4 = por %p357_p3, %p356_p2 }
  0x2c   :  { %275 = vmatpush3.msra.mxu1 %v63_v6 }
  0x2d   :  { %276 = vmatprep.subr.mxu1 %v382_v0  ;;  %p359_p5 = pnand %p358_p4, %p352_p1 }
  0x2e   :  { %277 = vmatpush3.msra.mxu1 %v62_v7 }
  0xeb   :  { %v144_v9 = vpop.f32.mrf.mxu0 }
  0xec   :  { %v145_v10 = vadd.f32 %v251_v8, %v144_v9 }
  0xed   :  { %v269_v11 = vpop.f32.mrf.mxu0 }
  0xee   :  { %v149_v12 = vmul.f32 0.70710677, %v145_v10  ;;  %v148_v14 = vmul.f32 0.5, %v145_v10 }
  0xf0   :  { %289 = verf.f32 %v149_v12 }
  0xfd   :  { %v290_v13 = vpop.eup %289 }
  0xfe   :  { %v151_v15 = vadd.f32 1.0, %v290_v13 }
 0x100   :  { %v152_v16 = vmul.f32 %v151_v15, %v148_v14 }
 0x102   :  { %279 = vmatmul.mubr.msk.f32.vlgmr.msra.gmra.mxu1 %vm160_vm2, %v152_v16 }
 0x1c2   :  { %v230_v18 = vpop.f32.mrf.mxu1 }
 0x1c3   :  { %v231_v19 = vadd.f32 %v253_v17, %v230_v18 }
 0x1c4   :  { %v280_v20 = vpop.f32.mrf.mxu1 }
 0x1c5   :  { %234 = vst.msk [vmem:[#allocation8] sm:$0xff] %vm160_vm2, %v231_v19 }
 0x1c6   :  { %362 = shalt.err (!%p359_p5)
}
 0x1c7   :  { %244 = dma.vmem_to_hbm [thread:$0]  %s242_s12, 128, %s438_s5, [#allocation4]  }
 0x1c8   :  { %375 = dma.done.wait [#allocation4], 128  }
 0x1c9   :  { %376 = vsyncadd [#allocation4], 4294967168 }
 0x1ca   :  { %248 = vsyncpa [#allocation3], 1 }
 0x1cb   :  { %249 = vsyncpa [#allocation6], 1 }
 0x1cc   :  { %250 = vsyncpa [#allocation4], 1 }

</bundles_post_ra>
